<compile_context>
chip_gen: v7x
topology: tpu7x:2x2x1
jax: 0.10.0
libtpu: 0.0.40
codegen_flags: <defaults>
</compile_context>

<pallas_src>
import jax
import jax.numpy as jnp
from jax.experimental import pallas as pl
from jax.experimental.pallas import tpu as pltpu


# ----------------------------------------------------------------------------
# Pallas kernel: the entire Post_Attn forward in one call
# ----------------------------------------------------------------------------
def _post_attn_kernel(x_ref, mask_ref, w1_ref, w2_ref, b_ref,
                      pooled_ref, attn_ref):
    # x:    (B, T, H) f32   VMEM
    # mask: (B, T)    f32   VMEM, {0, 1} dense form of mask_nonzero
    # w1:   (1, H)    f32   VMEM, Attn weight applied to x
    # w2:   (1, H)    f32   VMEM, Attn weight applied to root ( = mask * x[:,0,:] )
    # b:    (1,)      f32   SMEM, Attn bias (scalar)
    x = x_ref[...]
    mask = mask_ref[...]
    bsz, tlen, h = x.shape

    w1 = w1_ref[...].reshape(1, 1, h)
    w2 = w2_ref[...]
    bias = b_ref[0]

    # ---- attention logits (VPU multiply + reduce; no 1-wide MXU matmuls) ----
    # Attn(cat([x, root], -1)) == x @ w1 + root @ w2 + b,  root = mask * x[:,0,:]
    a_x = jnp.sum(x * w1, axis=-1)                               # (B, T)
    x0 = x[:, 0, :]                                              # (B, H)
    a_root = jnp.sum(x0 * w2, axis=-1, keepdims=True)            # (B, 1)
    logit = a_x + mask * a_root + bias                           # (B, T)

    # ---- PyTorch masking quirk: zero masked rows, then masked_fill(==0,-inf)
    logit = logit * mask
    logit = jnp.where(logit == 0.0, -jnp.inf, logit)

    # ---- softmax over the sequence dim (dim=1) ----
    m = jnp.max(logit, axis=1, keepdims=True)                    # (B, 1)
    p = jnp.exp(logit - m)                                       # (B, T)
    denom = jnp.sum(p, axis=1, keepdims=True)                    # (B, 1)
    attn = p * pl.reciprocal(denom, approx=True)                 # (B, T)

    # lane-dense (B, T) store; caller reshapes to (B, T, 1)
    attn_ref[...] = attn.astype(attn_ref.dtype)

    # ---- pooled output: x^T @ attn  ==  sum_t x[:,t,:] * attn[:,t] ----
    pooled_ref[...] = jnp.sum(x * attn[:, :, None], axis=1).astype(pooled_ref.dtype)


# ----------------------------------------------------------------------------
# Wrapper (Post_Attn.forward)
# ----------------------------------------------------------------------------
def post_attn_forward(weight, bias, x, mask_nonzero):
    """weight: (1, 2H) = nn.Linear(2H, 1).weight, bias: (1,), x: (B, T, H).
    mask_nonzero: (batch_idx, row_idx) index arrays, as in the PyTorch module."""
    batch_idx, row_idx = mask_nonzero
    bsz, tlen, h = x.shape

    # dense {0,1} mask equivalent to the index-tuple (forward-identical)
    mask = jnp.zeros((bsz, tlen), jnp.float32).at[batch_idx, row_idx].set(1.0)

    w1 = weight[:, :h].astype(jnp.float32)          # applied to x
    w2 = weight[:, h:].astype(jnp.float32)          # applied to root
    b = bias.reshape(1).astype(jnp.float32)

    pooled, attn = pl.pallas_call(
        _post_attn_kernel,
        out_shape=(jax.ShapeDtypeStruct((bsz, h), jnp.float32),
                   jax.ShapeDtypeStruct((bsz, tlen), jnp.float32)),
        in_specs=[
            pl.BlockSpec(memory_space=pltpu.MemorySpace.VMEM),   # x
            pl.BlockSpec(memory_space=pltpu.MemorySpace.VMEM),   # mask
            pl.BlockSpec(memory_space=pltpu.MemorySpace.VMEM),   # w1
            pl.BlockSpec(memory_space=pltpu.MemorySpace.VMEM),   # w2
            pl.BlockSpec(memory_space=pltpu.MemorySpace.SMEM),   # bias scalar
        ],
        out_specs=(
            pl.BlockSpec(memory_space=pltpu.MemorySpace.VMEM),
            pl.BlockSpec(memory_space=pltpu.MemorySpace.VMEM),
        ),
    )(x.astype(jnp.float32), mask, w1, w2, b)

    # match the PyTorch returns: (matmul(x^T, attn).squeeze(), attn (B,T,1))
    return pooled, attn[:, :, None]


# ----------------------------------------------------------------------------
# Pure-JAX reference (literal transcription of the PyTorch forward)
# ----------------------------------------------------------------------------
def post_attn_ref(weight, bias, x, mask_nonzero):
    bi, ri = mask_nonzero
    root = jnp.zeros_like(x).at[bi, ri, :].set(x[bi, 0, :])
    x_plus = jnp.concatenate([x, root], axis=-1)
    attn = x_plus @ weight.T + bias                                # (B, T, 1)
    mask_m = attn.at[bi, ri, :].set(0.0)
    attn = attn - mask_m
    attn = jnp.where(attn == 0.0, -jnp.inf, attn)
    attn = jax.nn.softmax(attn, axis=1)
    pooled = jnp.squeeze(jnp.matmul(jnp.transpose(x, (0, 2, 1)), attn), axis=-1)
    return pooled, attn


if __name__ == "__main__":
    B, T, H = 2, 8, 32
    key = jax.random.PRNGKey(0)
    kx, kw, kb = jax.random.split(key, 3)

    x = jax.random.normal(kx, (B, T, H), jnp.float32)
    # padded sequences: batch 0 has 8 valid rows, batch 1 has 6
    lengths = jnp.array([8, 6])
    valid = jnp.arange(T)[None, :] < lengths[:, None]               # (B, T) bool
    x = x * valid[:, :, None].astype(jnp.float32)                   # zero padded rows
    batch_idx, row_idx = jnp.nonzero(valid)                         # mask_nonzero

    bound = 1.0 / (2 * H) ** 0.5
    weight = jax.random.uniform(kw, (1, 2 * H), jnp.float32, -bound, bound)
    bias = jax.random.uniform(kb, (1,), jnp.float32, -bound, bound)

    fwd = jax.jit(post_attn_forward)
    pooled, attn = jax.block_until_ready(fwd(weight, bias, x, (batch_idx, row_idx)))

    ref_pooled, ref_attn = post_attn_ref(weight, bias, x, (batch_idx, row_idx))

    assert pooled.shape == (B, H) and attn.shape == (B, T, 1)
    assert bool(jnp.all(jnp.isfinite(pooled))) and bool(jnp.all(jnp.isfinite(attn)))
    assert bool(jnp.allclose(pooled, ref_pooled, rtol=5e-3, atol=5e-3))
    assert bool(jnp.allclose(attn, ref_attn, rtol=5e-3, atol=5e-3))
    print("KERNEL_OK")
</pallas_src>

<mosaic_0001>
module attributes {stable_mosaic.version = 11 : i64} {
  func.func @_post_attn_kernel(%arg0: memref<2x8x32xf32, #tpu.memory_space<vmem>>, %arg1: memref<2x8xf32, #tpu.memory_space<vmem>>, %arg2: memref<1x32xf32, #tpu.memory_space<vmem>>, %arg3: memref<1x32xf32, #tpu.memory_space<vmem>>, %arg4: memref<1xf32, #tpu.memory_space<smem>>, %arg5: memref<2x32xf32, #tpu.memory_space<vmem>>, %arg6: memref<2x8xf32, #tpu.memory_space<vmem>>) attributes {dimension_semantics = [], scalar_prefetch = 0 : i64, scratch_operands = 0 : i64, tpu.core_type = #tpu.core_type<tc>} {
    %c0 = arith.constant 0 : index
    %c0_0 = arith.constant 0 : index
    %c0_1 = arith.constant 0 : index
    %0 = vector.load %arg0[%c0, %c0_0, %c0_1] : memref<2x8x32xf32, #tpu.memory_space<vmem>>, vector<2x8x32xf32>
    %c0_2 = arith.constant 0 : index
    %c0_3 = arith.constant 0 : index
    %1 = vector.load %arg1[%c0_2, %c0_3] : memref<2x8xf32, #tpu.memory_space<vmem>>, vector<2x8xf32>
    %c0_4 = arith.constant 0 : index
    %c0_5 = arith.constant 0 : index
    %2 = vector.load %arg2[%c0_4, %c0_5] : memref<1x32xf32, #tpu.memory_space<vmem>>, vector<1x32xf32>
    %3 = vector.shape_cast %2 : vector<1x32xf32> to vector<1x1x32xf32>
    %c0_6 = arith.constant 0 : index
    %c0_7 = arith.constant 0 : index
    %4 = vector.load %arg3[%c0_6, %c0_7] : memref<1x32xf32, #tpu.memory_space<vmem>>, vector<1x32xf32>
    %c0_8 = arith.constant 0 : index
    %5 = memref.load %arg4[%c0_8] : memref<1xf32, #tpu.memory_space<smem>>
    %6 = vector.broadcast %3 : vector<1x1x32xf32> to vector<2x8x32xf32>
    %7 = arith.mulf %0, %6 : vector<2x8x32xf32>
    %cst = arith.constant dense<0.000000e+00> : vector<2x8xf32>
    %8 = vector.multi_reduction <add>, %7, %cst [2] : vector<2x8x32xf32> to vector<2x8xf32>
    %9 = vector.extract_strided_slice %0 {offsets = [0, 0, 0], sizes = [2, 1, 32], strides = [1, 1, 1]} : vector<2x8x32xf32> to vector<2x1x32xf32>
    %10 = vector.shape_cast %9 : vector<2x1x32xf32> to vector<2x32xf32>
    %11 = vector.broadcast %4 : vector<1x32xf32> to vector<2x32xf32>
    %12 = arith.mulf %10, %11 : vector<2x32xf32>
    %cst_9 = arith.constant dense<0.000000e+00> : vector<2xf32>
    %13 = vector.multi_reduction <add>, %12, %cst_9 [1] : vector<2x32xf32> to vector<2xf32>
    %14 = vector.shape_cast %13 : vector<2xf32> to vector<2x1xf32>
    %15 = vector.broadcast %14 : vector<2x1xf32> to vector<2x8xf32>
    %16 = arith.mulf %1, %15 : vector<2x8xf32>
    %17 = arith.addf %8, %16 : vector<2x8xf32>
    %18 = vector.broadcast %5 : f32 to vector<2x8xf32>
    %19 = arith.addf %17, %18 : vector<2x8xf32>
    %20 = arith.mulf %19, %1 : vector<2x8xf32>
    %cst_10 = arith.constant 0.000000e+00 : f32
    %21 = vector.broadcast %cst_10 : f32 to vector<2x8xf32>
    %22 = arith.cmpf oeq, %20, %21 : vector<2x8xf32>
    %cst_11 = arith.constant 0xFF800000 : f32
    %23 = vector.broadcast %cst_11 : f32 to vector<2x8xf32>
    %24 = arith.select %22, %23, %20 : vector<2x8xi1>, vector<2x8xf32>
    %cst_12 = arith.constant dense<0xFF800000> : vector<2xf32>
    %25 = vector.multi_reduction <maximumf>, %24, %cst_12 [1] : vector<2x8xf32> to vector<2xf32>
    %26 = vector.shape_cast %25 : vector<2xf32> to vector<2x1xf32>
    %27 = vector.broadcast %26 : vector<2x1xf32> to vector<2x8xf32>
    %28 = arith.subf %24, %27 : vector<2x8xf32>
    %29 = math.exp %28 : vector<2x8xf32>
    %cst_13 = arith.constant dense<0.000000e+00> : vector<2xf32>
    %30 = vector.multi_reduction <add>, %29, %cst_13 [1] : vector<2x8xf32> to vector<2xf32>
    %31 = vector.shape_cast %30 : vector<2xf32> to vector<2x1xf32>
    %32 = tpu.reciprocal %31 {approx = true} : vector<2x1xf32> -> vector<2x1xf32>
    %33 = vector.broadcast %32 : vector<2x1xf32> to vector<2x8xf32>
    %34 = arith.mulf %29, %33 : vector<2x8xf32>
    %c0_14 = arith.constant 0 : index
    %c0_15 = arith.constant 0 : index
    %35 = vector.load %arg6[%c0_14, %c0_15] : memref<2x8xf32, #tpu.memory_space<vmem>>, vector<2x8xf32>
    tpu.vector_store %arg6[%c0_14, %c0_15], %34 {strides = array<i32>} : memref<2x8xf32, #tpu.memory_space<vmem>>, vector<2x8xf32>,
    %36 = vector.shape_cast %34 : vector<2x8xf32> to vector<2x8x1xf32>
    %37 = vector.broadcast %36 : vector<2x8x1xf32> to vector<2x8x32xf32>
    %38 = arith.mulf %0, %37 : vector<2x8x32xf32>
    %cst_16 = arith.constant dense<0.000000e+00> : vector<2x32xf32>
    %39 = vector.multi_reduction <add>, %38, %cst_16 [1] : vector<2x8x32xf32> to vector<2x32xf32>
    %c0_17 = arith.constant 0 : index
    %c0_18 = arith.constant 0 : index
    %40 = vector.load %arg5[%c0_17, %c0_18] : memref<2x32xf32, #tpu.memory_space<vmem>>, vector<2x32xf32>
    tpu.vector_store %arg5[%c0_17, %c0_18], %39 {strides = array<i32>} : memref<2x32xf32, #tpu.memory_space<vmem>>, vector<2x32xf32>,
    return
  }
}

</mosaic_0001>

<bundles_post_ra>
// kernel: post_attn_forward.1
= control target key start
LH: loop header
LB: loop body
LE: loop exit
PB: predicated region body
PF: predicated region fallthrough
CT: control target
= control target key end

     0   :  { %13 = vsyncpa [#allocation4], 0  ;;  %vm39_vm0 = vcmask 261120   ;;  %vm57_vm1 = vcmask 1041409   ;;  %s433_s0 = inlined_call_operand.vmem [shape: f32[2,8,32], index: 0, kind: input, shape index: {}]   ;;  %s434_s1 = inlined_call_operand.vmem [shape: f32[2,8], index: 1, kind: input, shape index: {}]   ;;  %s435_s2 = inlined_call_operand.vmem [shape: f32[1,32], index: 2, kind: input, shape index: {}]   ;;  %s436_s3 = inlined_call_operand.vmem [shape: f32[1,32], index: 3, kind: input, shape index: {}]   ;;  %s437_s4 = inlined_call_operand.<no memory space> [shape: f32[1], index: 4, kind: input, shape index: {}]   ;;  %s438_s5 = inlined_call_operand.hbm [shape: f32[2,32], index: 5, kind: output, shape index: {0}]   ;;  %s439_s6 = inlined_call_operand.hbm [shape: f32[2,8], index: 6, kind: output, shape index: {1}]  }
   0x1   :  { %v358_v0 = vld [vmem:[%s433_s0] sm:$0xff]  ;;  %v363_v1 = vld [vmem:[%s433_s0 + $0x8] sm:$0xff] }
   0x2   :  { %v257_v2 = vld [vmem:[%s436_s3] ss:$0 sm:$0xff] }
   0x3   :  { %v52_v3 = vmul.f32 %v257_v2, %v358_v0  ;;  %v53_v4 = vmul.f32 %v257_v2, %v363_v1  ;;  %v256_v5 = vld [vmem:[%s435_s2] ss:$0 sm:$0xff] }
   0x4   :  { %v38_v6 = vmul.f32 %v256_v5, %v363_v1 }
   0x5   :  { %14 = vsyncpa [#allocation6], 0  ;;  %v56_v7 = vrot.slane %v53_v4, 7  ;;  %vm60_vm2 = vcmask 254976   ;;  %v37_v9 = vmul.f32 %v256_v5, %v358_v0  ;;  %v66_v13 = vlaneseq  ;;  %v27_v15 = vld [vmem:[%s434_s1] sm:$0x3] }
   0x6   :  { %v43_v8 = vsel %vm39_vm0, %v38_v6, 0.0  ;;  %v317_v18 = vmov 0   ;;  %v84_v29 = vstv %s437_s4  ;;  %vm130_vm5 = vcmask 58368   ;;  %s318_s4 = smov [#allocation5]  }
   0x7   :  { %v58_v10 = vsel %vm57_vm1, %v56_v7, %v52_v3  ;;  %44 = vadd.xlane.f32.xlu1 %v43_v8  ;;  %v40_v12 = vsel %vm39_vm0, %v37_v9, 0.0  ;;  %v67_v14 = vshrl.u32 %v66_v13, 7  ;;  %262 = vset.pattern.permute.xlu0 %v317_v18  ;;  %v119_v40 = vand.u32 127, %v66_v13  ;;  %s244_s29 = sshll.u32 %s318_s4, 4  ;;  %s245_s29 = int_to_ptr.vmem [resolvable:$true] %s244_s29 }
   0x8   :  { %v61_v11 = vsel %vm60_vm2, %v58_v10, 0.0  ;;  %261 = vset.pattern.permute.xlu1 %v317_v18  ;;  %s269_s30 = scalar_lea.vmem %s245_s29, 32  ;;  %p274_p1 = scmp.lt.s32.totalorder %s245_s29, %s245_s29 }
   0x9   :  { %62 = vadd.xlane.f32.xlu0 %v61_v11  ;;  %v382_v16 = vsub.s32 0, %v67_v14  ;;  %v384_v17 = vsub.s32 1, %v67_v14  ;;  %v122_v41 = vsub.s32 %v119_v40, %v67_v14  ;;  %p270_p0 = scmp.ne.s32.totalorder %s245_s29, %s269_s30  ;;  %p275_p2 = scmp.lt.s32.totalorder %s269_s30, %s269_s30 }
   0xb   :  { %v91_v23 = vrot.slane %v27_v15, %v382_v16  ;;  %v98_v24 = vrot.slane %v27_v15, %v384_v17  ;;  %p276_p3 = por %p275_p2, %p274_p1 }
   0xd   :  { %41 = vadd.xlane.f32.xlu0 %v40_v12  ;;  %p277_p4 = pnand %p276_p3, %p270_p0 }
  0x94   :  { %v45_v25 = vpop.xlane.xlu1 %44 }
  0x96   :  { %v63_v19 = vpop.xlane.xlu0 %62 }
  0x97   :  { %v64_v20 = vmul.f32 %v63_v19, %v27_v15 }
  0x99   :  { %v69_v21 = vrot.slane %v64_v20, %v382_v16  ;;  %v76_v22 = vrot.slane %v64_v20, %v384_v17 }
  0x9a   :  { %v42_v26 = vpop.xlane.xlu0 %41 }
  0x9b   :  { %71 = vbcast.lane.b32.xlu1 %v69_v21, 256  ;;  %78 = vbcast.lane.b32.xlu0 %v76_v22, 256 }
  0x9f   :  { %93 = vbcast.lane.b32.xlu1 %v91_v23, 256 }
  0xa3   :  { %100 = vbcast.lane.b32.xlu1 %v98_v24, 256 }
 0x10d   :  { %v72_v27 = vpop.permute.xlu1 %71  ;;  %v79_v28 = vpop.permute.xlu0 %78 }
 0x10e   :  { %v82_v30 = vadd.f32 %v72_v27, %v42_v26  ;;  %v83_v31 = vadd.f32 %v79_v28, %v45_v25 }
 0x110   :  { %v85_v32 = vadd.f32 %v84_v29, %v82_v30  ;;  %v86_v35 = vadd.f32 %v84_v29, %v83_v31 }
 0x111   :  { %v94_v33 = vpop.permute.xlu1 %93 }
 0x112   :  { %v104_v34 = vmul.f32 %v94_v33, %v85_v32 }
 0x114   :  { %vm106_vm3 = vcmp.eq.f32.partialorder %v104_v34, 0.0 }
 0x115   :  { %v101_v36 = vpop.permute.xlu1 %100  ;;  %v108_v37 = vsel %vm106_vm3, -inf, %v104_v34 }
 0x116   :  { %v105_v38 = vmul.f32 %v101_v36, %v86_v35  ;;  %113 = vperm.xlu1 %261, %v108_v37  }
 0x118   :  { %vm107_vm4 = vcmp.eq.f32.partialorder %v105_v38, 0.0 }
 0x119   :  { %v109_v39 = vsel %vm107_vm4, -inf, %v105_v38 }
 0x11a   :  { %116 = vperm.xlu0 %262, %v109_v39  }
 0x195   :  { %v114_v42 = vpop.permute.xlu1 %113 }
 0x196   :  { %v123_v44 = vrot.slane %v114_v42, %v122_v41 }
 0x199   :  { %v117_v43 = vpop.permute.xlu0 %116 }
 0x19a   :  { %v127_v45 = vrot.slane %v117_v43, %v122_v41 }
 0x19c   :  { %v128_v46 = vsel %vm57_vm1, %v127_v45, %v123_v44 }
 0x19d   :  { %v131_v47 = vsel %vm130_vm5, %v128_v46, -inf }
 0x19e   :  { %132 = vmax.xlane.f32.xlu1 %v131_v47 }
 0x22b   :  { %v133_v48 = vpop.xlane.xlu1 %132 }
 0x22c   :  { %v138_v49 = vrot.slane %v133_v48, %v382_v16  ;;  %v142_v50 = vrot.slane %v133_v48, %v384_v17 }
 0x22e   :  { %v145_v51 = vsub.f32 %v108_v37, %v138_v49  ;;  %v146_v52 = vsub.f32 %v109_v39, %v142_v50 }
 0x230   :  { %v147_v53 = vmul.f32 1.442695, %v145_v51  ;;  %v149_v54 = vmul.f32 1.442695, %v146_v52 }
 0x232   :  { %263 = vpow2.f32 %v147_v53 }
 0x233   :  { %265 = vpow2.f32 %v149_v54 }
 0x23c   :  { %v264_v55 = vpop.eup %263 }
 0x23d   :  { %154 = vperm.xlu0 %262, %v264_v55   ;;  %v266_v56 = vpop.eup %265 }
 0x241   :  { %157 = vperm.xlu0 %262, %v266_v56  }
 0x2bc   :  { %v155_v57 = vpop.permute.xlu0 %154 }
 0x2bd   :  { %v162_v59 = vrot.slane %v155_v57, %v122_v41 }
 0x2c0   :  { %v158_v58 = vpop.permute.xlu0 %157 }
 0x2c1   :  { %v166_v60 = vrot.slane %v158_v58, %v122_v41 }
 0x2c3   :  { %v167_v61 = vsel %vm57_vm1, %v166_v60, %v162_v59 }
 0x2c4   :  { %v169_v62 = vsel %vm130_vm5, %v167_v61, 0.0 }
 0x2c5   :  { %170 = vadd.xlane.f32.xlu0 %v169_v62 }
 0x352   :  { %v171_v63 = vpop.xlane.xlu0 %170 }
 0x353   :  { %267 = vrcp.f32 %v171_v63 }
 0x35d   :  { %v268_v2 = vpop.eup %267 }
 0x35e   :  { %v181_v3 = vrot.slane %v268_v2, %v384_v17  ;;  %v177_v4 = vrot.slane %v268_v2, %v382_v16 }
 0x360   :  { %v185_v5 = vmul.f32 %v266_v56, %v181_v3  ;;  %v184_v6 = vmul.f32 %v264_v55, %v177_v4 }
 0x362   :  { %192 = vperm.xlu0 %262, %v185_v5   ;;  %189 = vperm.xlu1 %261, %v184_v6  }
 0x3e1   :  { %v193_v7 = vpop.permute.xlu0 %192  ;;  %v190_v8 = vpop.permute.xlu1 %189 }
 0x3e2   :  { %v201_v9 = vrot.slane %v193_v7, %v122_v41  ;;  %v208_v10 = vmul.f32 %v193_v7, %v363_v1  ;;  %v197_v11 = vrot.slane %v190_v8, %v122_v41  ;;  %v207_v12 = vmul.f32 %v190_v8, %v358_v0 }
 0x3e4   :  { %v216_v13 = vsel %vm39_vm0, %v208_v10, 0.0  ;;  %v209_v14 = vsel %vm39_vm0, %v207_v12, 0.0  ;;  %v202_v15 = vsel %vm57_vm1, %v201_v9, %v197_v11 }
 0x3e5   :  { %v217_v16 = vrot.slane %v216_v13, 4  ;;  %v210_v17 = vrot.slane %v209_v14, 4  ;;  %204 = vst.msk [vmem:[#allocation5] sm:$0x3] %vm130_vm5, %v202_v15 }
 0x3e6   :  { %280 = shalt.err (!%p277_p4)
}
 0x3e7   :  { %s281_s9 = scalar_lea.hbm %s439_s6, 32 }
 0x3e8   :  { %p282_p5 = scmp.ne.s32.totalorder %s439_s6, %s281_s9  ;;  %p285_p6 = scmp.lt.u32.totalorder %s281_s9, %s439_s6 }
 0x3ea   :  { %p287_p7 = pnand %p285_p6, %p282_p5 }
 0x3ec   :  { %290 = shalt.err (!%p287_p7)
}
 0x3ed   :  { %247 = dma.vmem_to_hbm [thread:$0]  %s245_s29, 32, %s439_s6, [#allocation6]   ;;  %v218_v0 = vadd.f32 %v217_v16, %v216_v13  ;;  %v211_v1 = vadd.f32 %v210_v17, %v209_v14 }
 0x3ee   :  { %s319_s16 = smov [#allocation3]  }
 0x3ef   :  { %v219_v18 = vrot.slane %v218_v0, 2  ;;  %v212_v19 = vrot.slane %v211_v1, 2  ;;  %s234_s17 = sshll.u32 %s319_s16, 4  ;;  %s235_s17 = int_to_ptr.vmem [resolvable:$true] %s234_s17 }
 0x3f0   :  { %s291_s18 = scalar_lea.vmem %s235_s17, 32  ;;  %p296_p9 = scmp.lt.s32.totalorder %s235_s17, %s235_s17 }
 0x3f1   :  { %v220_v20 = vadd.f32 %v219_v18, %v218_v0  ;;  %v213_v21 = vadd.f32 %v212_v19, %v211_v1  ;;  %p292_p8 = scmp.ne.s32.totalorder %s235_s17, %s291_s18  ;;  %p297_p10 = scmp.lt.s32.totalorder %s291_s18, %s291_s18 }
 0x3f3   :  { %v221_v22 = vrot.slane %v220_v20, 1  ;;  %v214_v23 = vrot.slane %v213_v21, 1  ;;  %p298_p11 = por %p297_p10, %p296_p9 }
 0x3f5   :  { %v215_v24 = vadd.f32 %v214_v23, %v213_v21  ;;  %v222_v25 = vadd.f32 %v221_v22, %v220_v20  ;;  %p299_p12 = pnand %p298_p11, %p292_p8 }
 0x3f7   :  { %v225_v26 = vsel %vm57_vm1, %v222_v25, %v215_v24 }
 0x3f8   :  { %227 = vst.msk [vmem:[#allocation3] sm:$0x3] %vm60_vm2, %v225_v26 }
 0x3f9   :  { %302 = shalt.err (!%p299_p12)
}
 0x3fa   :  { %s303_s20 = scalar_lea.hbm %s438_s5, 32 }
 0x3fb   :  { %p304_p13 = scmp.ne.s32.totalorder %s438_s5, %s303_s20  ;;  %p307_p0 = scmp.lt.u32.totalorder %s303_s20, %s438_s5 }
 0x3fd   :  { %p309_p1 = pnand %p307_p0, %p304_p13 }
 0x3ff   :  { %312 = shalt.err (!%p309_p1)
}
 0x400   :  { %237 = dma.vmem_to_hbm [thread:$0]  %s235_s17, 32, %s438_s5, [#allocation4]  }
 0x401   :  { %313 = dma.done.wait [#allocation4], 32  }
 0x402   :  { %314 = vsyncadd [#allocation4], 4294967264 }
 0x403   :  { %315 = dma.done.wait [#allocation6], 32  }
 0x404   :  { %316 = vsyncadd [#allocation6], 4294967264 }
 0x405   :  { %254 = vsyncpa [#allocation4], 1 }
 0x406   :  { %255 = vsyncpa [#allocation6], 1 }

</bundles_post_ra>
